<compile_context>
chip_gen: v6e
topology: v6e:2x2x1
jax: 0.10.0
libtpu: 0.0.40
codegen_flags: <defaults>
</compile_context>

<pallas_src>
import jax
import jax.numpy as jnp
from jax.experimental import pallas as pl
from jax.experimental.pallas import tpu as pltpu  # noqa: F401  (TPU backend)

# ---- module hyper-parameters ----
DIM = 32            # `dim`
NUM_CLASSES = 10    # `num_classes`
BATCH = 2
LANES = 128         # TPU lane width; everything is padded to lane-dense 128

# ---- packed parameter slab layout (rows x 128 lanes, f32) ----
R_W1A = 0                 # rows [  0: 32)  W1 rows for input_a   (DIM, 128)
R_W1B = DIM               # rows [ 32: 64)  W1 rows for input_b   (DIM, 128)
R_W2 = 2 * DIM            # rows [ 64:192)  W2 padded             (128, 128)
R_W3 = R_W2 + LANES       # rows [192:320)  W3 padded             (128, 128)
R_B1 = R_W3 + LANES       # row   320       b1 padded             (1, 128)
R_B2 = R_B1 + 1           # row   321       b2 padded             (1, 128)
R_B3 = R_B2 + 1           # row   322       b3 padded             (1, 128)
P_ROWS = ((R_B3 + 1 + 7) // 8) * 8          # 328 (multiple of 8 sublanes)


def pack_params(w1, b1, w2, b2, w3, b3):
    """Pack weights/biases into one zero-padded (P_ROWS, 128) f32 slab.

    Called ONCE at parameter-init/load time (not per forward call).
    Weights are expected as (in_features, out_features); a PyTorch checkpoint
    (out, in) must be transposed once at load time.
    """
    slab = jnp.zeros((P_ROWS, LANES), jnp.float32)
    slab = slab.at[R_W1A:R_W1A + 2 * DIM, :DIM].set(w1.astype(jnp.float32))
    slab = slab.at[R_W2:R_W2 + DIM, :DIM].set(w2.astype(jnp.float32))
    slab = slab.at[R_W3:R_W3 + DIM, :NUM_CLASSES].set(w3.astype(jnp.float32))
    slab = slab.at[R_B1, :DIM].set(b1.astype(jnp.float32))
    slab = slab.at[R_B2, :DIM].set(b2.astype(jnp.float32))
    slab = slab.at[R_B3, :NUM_CLASSES].set(b3.astype(jnp.float32))
    return slab


def _dense_fenlei_kernel(x_ref, p_ref, o_ref):
    """Whole forward pass for the full batch in one invocation.

    x_ref : (2, B, DIM)      VMEM  — x_ref[0]=input_a, x_ref[1]=input_b
    p_ref : (P_ROWS, 128)    VMEM  — packed weights + biases (see layout above)
    o_ref : (B, 128)         VMEM  — lane-dense logits (first NUM_CLASSES valid)
    """
    a = x_ref[0]                                  # (B, DIM)
    b = x_ref[1]                                  # (B, DIM)

    # Static, 8-aligned row slices of the slab — free views, no copies.
    w1a = p_ref[R_W1A:R_W1A + DIM, :]             # (DIM, 128)
    w1b = p_ref[R_W1B:R_W1B + DIM, :]             # (DIM, 128)
    w2 = p_ref[R_W2:R_W2 + LANES, :]              # (128, 128), zero-padded
    w3 = p_ref[R_W3:R_W3 + LANES, :]              # (128, 128), zero-padded
    b1 = p_ref[R_B1:R_B1 + 1, :]                  # (1, 128)
    b2 = p_ref[R_B2:R_B2 + 1, :]                  # (1, 128)
    b3 = p_ref[R_B3:R_B3 + 1, :]                  # (1, 128)

    # fc1 on cat([a, b], dim=1) as a split matmul (no lane-concat):
    #   cat(a, b) @ W1 == a @ W1[:DIM] + b @ W1[DIM:]
    h = (jnp.dot(a, w1a, preferred_element_type=jnp.float32)
         + jnp.dot(b, w1b, preferred_element_type=jnp.float32)
         + b1)
    h = jnp.maximum(h, 0.0)                       # ReLU; Dropout(0.0) = identity

    # fc2 + ReLU (padded rows/lanes of w2 are zero -> exact)
    h = jnp.dot(h, w2, preferred_element_type=jnp.float32) + b2
    h = jnp.maximum(h, 0.0)                       # ReLU; Dropout(0.0) = identity

    # fc3 (logits, first NUM_CLASSES lanes valid)
    o = jnp.dot(h, w3, preferred_element_type=jnp.float32) + b3
    o_ref[...] = o.astype(o_ref.dtype)            # unmasked lane-dense store


@jax.jit
def dense_fenlei_forward(input_a, input_b, packed_params):
    """input_a, input_b: (B, DIM) float32. Returns (B, NUM_CLASSES) logits."""
    B = input_a.shape[0]
    # One activation operand (one DMA) instead of two.
    x = jnp.stack([input_a, input_b], axis=0)     # (2, B, DIM)
    # No grid: single invocation, everything resident in VMEM (default specs).
    out = pl.pallas_call(
        _dense_fenlei_kernel,
        out_shape=jax.ShapeDtypeStruct((B, LANES), input_a.dtype),
    )(x, packed_params)
    return out[:, :NUM_CLASSES]


def _reference(input_a, input_b, w1, b1, w2, b2, w3, b3):
    """Pure-JAX reference replicating the PyTorch forward (dropout p=0.0)."""
    x = jnp.concatenate([input_a, input_b], axis=1)
    x = jax.nn.relu(x @ w1 + b1)
    x = jax.nn.relu(x @ w2 + b2)
    return x @ w3 + b3


if __name__ == "__main__":
    key = jax.random.PRNGKey(0)
    ka, kb, k1, kb1, k2, kb2, k3, kb3 = jax.random.split(key, 8)

    # Deterministic synthetic inputs / parameters (shapes follow __init__).
    input_a = jax.random.normal(ka, (BATCH, DIM), dtype=jnp.float32)
    input_b = jax.random.normal(kb, (BATCH, DIM), dtype=jnp.float32)

    # Weights stored as (in_features, out_features).
    w1 = jax.random.normal(k1, (2 * DIM, DIM), dtype=jnp.float32) * 0.05
    b1 = jax.random.normal(kb1, (DIM,), dtype=jnp.float32) * 0.05
    w2 = jax.random.normal(k2, (DIM, DIM), dtype=jnp.float32) * 0.05
    b2 = jax.random.normal(kb2, (DIM,), dtype=jnp.float32) * 0.05
    w3 = jax.random.normal(k3, (DIM, NUM_CLASSES), dtype=jnp.float32) * 0.05
    b3 = jax.random.normal(kb3, (NUM_CLASSES,), dtype=jnp.float32) * 0.05

    # Pack once at init time (not per call).
    packed = jax.block_until_ready(pack_params(w1, b1, w2, b2, w3, b3))

    y = dense_fenlei_forward(input_a, input_b, packed)
    y = jax.block_until_ready(y)

    y_ref = _reference(input_a, input_b, w1, b1, w2, b2, w3, b3)
    assert y.shape == (BATCH, NUM_CLASSES)
    assert jnp.allclose(y, y_ref, atol=1e-4, rtol=1e-4), "mismatch vs reference"

    # TODO(synk): training-mode dropout (p > 0) would need in-kernel PRNG
    # masking (pltpu.prng_seed / prng_random_bits); p = 0.0 here -> identity.
    print("KERNEL_OK")
</pallas_src>

<mosaic_0001>
module attributes {stable_mosaic.version = 11 : i64} {
  func.func @_dense_fenlei_kernel(%arg0: memref<2x2x32xf32, #tpu.memory_space<vmem>>, %arg1: memref<328x128xf32, #tpu.memory_space<vmem>>, %arg2: memref<2x128xf32, #tpu.memory_space<vmem>>) attributes {dimension_semantics = [], scalar_prefetch = 0 : i64, scratch_operands = 0 : i64, tpu.core_type = #tpu.core_type<tc>} {
    %c0 = arith.constant 0 : index
    %c0_0 = arith.constant 0 : index
    %c0_1 = arith.constant 0 : index
    %0 = vector.load %arg0[%c0, %c0_0, %c0_1] : memref<2x2x32xf32, #tpu.memory_space<vmem>>, vector<1x2x32xf32>
    %1 = vector.shape_cast %0 : vector<1x2x32xf32> to vector<2x32xf32>
    %c1 = arith.constant 1 : index
    %c0_2 = arith.constant 0 : index
    %c0_3 = arith.constant 0 : index
    %2 = vector.load %arg0[%c1, %c0_2, %c0_3] : memref<2x2x32xf32, #tpu.memory_space<vmem>>, vector<1x2x32xf32>
    %3 = vector.shape_cast %2 : vector<1x2x32xf32> to vector<2x32xf32>
    %c0_4 = arith.constant 0 : index
    %c0_5 = arith.constant 0 : index
    %4 = vector.load %arg1[%c0_4, %c0_5] : memref<328x128xf32, #tpu.memory_space<vmem>>, vector<32x128xf32>
    %c32 = arith.constant 32 : index
    %c0_6 = arith.constant 0 : index
    %5 = vector.load %arg1[%c32, %c0_6] : memref<328x128xf32, #tpu.memory_space<vmem>>, vector<32x128xf32>
    %c64 = arith.constant 64 : index
    %c0_7 = arith.constant 0 : index
    %6 = vector.load %arg1[%c64, %c0_7] : memref<328x128xf32, #tpu.memory_space<vmem>>, vector<128x128xf32>
    %c192 = arith.constant 192 : index
    %c0_8 = arith.constant 0 : index
    %7 = vector.load %arg1[%c192, %c0_8] : memref<328x128xf32, #tpu.memory_space<vmem>>, vector<128x128xf32>
    %c320 = arith.constant 320 : index
    %c0_9 = arith.constant 0 : index
    %8 = vector.load %arg1[%c320, %c0_9] : memref<328x128xf32, #tpu.memory_space<vmem>>, vector<1x128xf32>
    %c321 = arith.constant 321 : index
    %c0_10 = arith.constant 0 : index
    %9 = vector.load %arg1[%c321, %c0_10] : memref<328x128xf32, #tpu.memory_space<vmem>>, vector<1x128xf32>
    %c322 = arith.constant 322 : index
    %c0_11 = arith.constant 0 : index
    %10 = vector.load %arg1[%c322, %c0_11] : memref<328x128xf32, #tpu.memory_space<vmem>>, vector<1x128xf32>
    %cst = arith.constant dense<0.000000e+00> : vector<2x128xf32>
    %11 = tpu.matmul %1, %4, %cst {dimension_numbers = #tpu.dot_dimension_numbers<[1], [0], [0], [1], [0, 0, 1, 1], [], []>} : vector<2x32xf32>, vector<32x128xf32>, vector<2x128xf32> -> vector<2x128xf32>
    %cst_12 = arith.constant dense<0.000000e+00> : vector<2x128xf32>
    %12 = tpu.matmul %3, %5, %cst_12 {dimension_numbers = #tpu.dot_dimension_numbers<[1], [0], [0], [1], [0, 0, 1, 1], [], []>} : vector<2x32xf32>, vector<32x128xf32>, vector<2x128xf32> -> vector<2x128xf32>
    %13 = arith.addf %11, %12 : vector<2x128xf32>
    %14 = vector.broadcast %8 : vector<1x128xf32> to vector<2x128xf32>
    %15 = arith.addf %13, %14 : vector<2x128xf32>
    %cst_13 = arith.constant 0.000000e+00 : f32
    %16 = vector.broadcast %cst_13 : f32 to vector<2x128xf32>
    %17 = arith.maximumf %15, %16 : vector<2x128xf32>
    %cst_14 = arith.constant dense<0.000000e+00> : vector<2x128xf32>
    %18 = tpu.matmul %17, %6, %cst_14 {dimension_numbers = #tpu.dot_dimension_numbers<[1], [0], [0], [1], [0, 0, 1, 1], [], []>} : vector<2x128xf32>, vector<128x128xf32>, vector<2x128xf32> -> vector<2x128xf32>
    %19 = vector.broadcast %9 : vector<1x128xf32> to vector<2x128xf32>
    %20 = arith.addf %18, %19 : vector<2x128xf32>
    %cst_15 = arith.constant 0.000000e+00 : f32
    %21 = vector.broadcast %cst_15 : f32 to vector<2x128xf32>
    %22 = arith.maximumf %20, %21 : vector<2x128xf32>
    %cst_16 = arith.constant dense<0.000000e+00> : vector<2x128xf32>
    %23 = tpu.matmul %22, %7, %cst_16 {dimension_numbers = #tpu.dot_dimension_numbers<[1], [0], [0], [1], [0, 0, 1, 1], [], []>} : vector<2x128xf32>, vector<128x128xf32>, vector<2x128xf32> -> vector<2x128xf32>
    %24 = vector.broadcast %10 : vector<1x128xf32> to vector<2x128xf32>
    %25 = arith.addf %23, %24 : vector<2x128xf32>
    %c0_17 = arith.constant 0 : index
    %c0_18 = arith.constant 0 : index
    %26 = vector.load %arg2[%c0_17, %c0_18] : memref<2x128xf32, #tpu.memory_space<vmem>>, vector<2x128xf32>
    tpu.vector_store %arg2[%c0_17, %c0_18], %25 {strides = array<i32>} : memref<2x128xf32, #tpu.memory_space<vmem>>, vector<2x128xf32>,
    return
  }
}

</mosaic_0001>

<bundles_post_ra>
// kernel: dense_fenlei_forward.1
= control target key start
LH: loop header
LB: loop body
LE: loop exit
PB: predicated region body
PF: predicated region fallthrough
CT: control target
= control target key end

     0   :  { %7 = vsyncpa [#allocation3], 0  ;;  %s663_s0 = inlined_call_operand.vmem [shape: f32[2,2,32], index: 0, kind: input, shape index: {}]   ;;  %s664_s1 = inlined_call_operand.hbm [shape: f32[328,128], index: 1, kind: input, shape index: {}]   ;;  %s665_s2 = inlined_call_operand.hbm [shape: f32[2,128], index: 2, kind: output, shape index: {}]  }
   0x1   :  { %8 = vsyncpa [#allocation4], 0  ;;  %s582_s9 = smov [#allocation2]  }
   0x2   :  { %s16_s10 = sshll.u32 %s582_s9, 4  ;;  %s17_s10 = int_to_ptr.vmem [resolvable:$true] %s16_s10 }
   0x3   :  { %s546_s11 = scalar_lea.vmem %s17_s10, 5248  ;;  %p551_p1 = scmp.lt.s32.totalorder %s17_s10, %s17_s10 }
   0x4   :  { %p547_p0 = scmp.ne.s32.totalorder %s17_s10, %s546_s11  ;;  %p552_p2 = scmp.lt.s32.totalorder %s546_s11, %s546_s11 }
   0x6   :  { %p553_p3 = por %p552_p2, %p551_p1 }
   0x8   :  { %p554_p4 = pnand %p553_p3, %p547_p0 }
   0xa   :  { %557 = shalt.err (!%p554_p4)
}
   0xb   :  { %s583_s12 = smov 128   ;;  %s584_s13 = smov 8  }
   0xc   :  { %22 = dma.hbm_to_vmem [thread:$0]  %s664_s1, 5248, %s17_s10, [#allocation3], %s583_s12, %s583_s12, %s584_s13  }
   0xd   :  { %578 = dma.done.wait [#allocation3], 5248  }
   0xe   :  { %579 = vsyncadd [#allocation3], 4294962048  ;;  %v585_v0 = vmov 0.0   ;;  %vm586_vm0 = vmmov 0   ;;  %v36_v1 = vld [vmem:[#allocation2 + $0x38] sm:$0xff]  ;;  %v35_v3 = vld [vmem:[#allocation2 + $0x30] sm:$0xff] }
   0xf   :  { %440 = vmatprep.subr.mxu0 %v585_v0  ;;  %451 = vmatprep.subr.mxu1 %v585_v0  ;;  %v32_v2 = vld [vmem:[#allocation2 + $0x18] sm:$0xff]  ;;  %v31_v4 = vld [vmem:[#allocation2 + $0x10] sm:$0xff]  ;;  %v34_v5 = vld [vmem:[#allocation2 + $0x28] sm:$0xff]  ;;  %vm72_vm1 = vcmask 261120  }
  0x10   :  { %448 = vmatprep.mubr.msk.f32.mxu0 %vm586_vm0, %v585_v0  ;;  %459 = vmatprep.mubr.msk.f32.mxu1 %vm586_vm0, %v585_v0  ;;  %v30_v6 = vld [vmem:[#allocation2 + $0x8] sm:$0xff]  ;;  %v33_v7 = vld [vmem:[#allocation2 + $0x20] sm:$0xff]  ;;  %v52_v11 = vld [vmem:[#allocation2 + $0xb8] sm:$0xff] }
  0x11   :  { %441 = vmatpush3.msra.mxu0 %v36_v1  ;;  %452 = vmatpush3.msra.mxu1 %v32_v2  ;;  %v29_v8 = vld [vmem:[#allocation2] sm:$0xff]  ;;  %v51_v12 = vld [vmem:[#allocation2 + $0xb0] sm:$0xff]  ;;  %v50_v13 = vld [vmem:[#allocation2 + $0xa8] sm:$0xff] }
  0x12   :  { %442 = vmatprep.subr.mxu0 %v585_v0  ;;  %453 = vmatprep.subr.mxu1 %v585_v0  ;;  %v390_v9 = vld [vmem:[%s663_s0 + $0x2] sm:$0x3]  ;;  %v26_v10 = vld [vmem:[%s663_s0] sm:$0x3]  ;;  %v48_v15 = vld [vmem:[#allocation2 + $0x98] sm:$0xff]  ;;  %s587_s0 = smov [#allocation5]  }
  0x13   :  { %443 = vmatpush3.msra.mxu0 %v35_v3  ;;  %454 = vmatpush3.msra.mxu1 %v31_v4  ;;  %v49_v14 = vld [vmem:[#allocation2 + $0xa0] sm:$0xff]  ;;  %v47_v16 = vld [vmem:[#allocation2 + $0x90] sm:$0xff]  ;;  %v46_v17 = vld [vmem:[#allocation2 + $0x88] sm:$0xff]  ;;  %s381_s19 = sshll.u32 %s587_s0, 4  ;;  %s382_s19 = int_to_ptr.vmem [resolvable:$true] %s381_s19 }
  0x14   :  { %444 = vmatprep.subr.mxu0 %v585_v0  ;;  %455 = vmatprep.subr.mxu1 %v585_v0  ;;  %v45_v18 = vld [vmem:[#allocation2 + $0x80] sm:$0xff]  ;;  %v44_v19 = vld [vmem:[#allocation2 + $0x78] sm:$0xff]  ;;  %v43_v20 = vld [vmem:[#allocation2 + $0x70] sm:$0xff]  ;;  %s558_s20 = scalar_lea.vmem %s382_s19, 32  ;;  %p563_p6 = scmp.lt.s32.totalorder %s382_s19, %s382_s19 }
  0x15   :  { %445 = vmatpush3.msra.mxu0 %v34_v5  ;;  %456 = vmatpush3.msra.mxu1 %v30_v6  ;;  %v42_v21 = vld [vmem:[#allocation2 + $0x68] sm:$0xff]  ;;  %v41_v22 = vld [vmem:[#allocation2 + $0x60] sm:$0xff]  ;;  %v40_v23 = vld [vmem:[#allocation2 + $0x58] sm:$0xff]  ;;  %p559_p5 = scmp.ne.s32.totalorder %s382_s19, %s558_s20  ;;  %p564_p7 = scmp.lt.s32.totalorder %s558_s20, %s558_s20 }
  0x16   :  { %446 = vmatprep.subr.mxu0 %v585_v0  ;;  %457 = vmatprep.subr.mxu1 %v585_v0  ;;  %v39_v24 = vld [vmem:[#allocation2 + $0x50] sm:$0xff]  ;;  %v38_v25 = vld [vmem:[#allocation2 + $0x48] sm:$0xff]  ;;  %v37_v26 = vld [vmem:[#allocation2 + $0x40] sm:$0xff] }
  0x17   :  { %447 = vmatpush3.msra.mxu0 %v33_v7  ;;  %458 = vmatpush3.msra.mxu1 %v29_v8  ;;  %v68_v27 = vld [vmem:[#allocation2 + $0x138] sm:$0xff]  ;;  %v67_v28 = vld [vmem:[#allocation2 + $0x130] sm:$0xff]  ;;  %v66_v29 = vld [vmem:[#allocation2 + $0x128] sm:$0xff]  ;;  %p565_p8 = por %p564_p7, %p563_p6 }
  0x18   :  { %449 = vmatmul.mubr.msk.f32.vlgmr.msra.gmra.mxu0 %vm72_vm1, %v390_v9  ;;  %460 = vmatmul.mubr.msk.f32.vlgmr.msra.gmra.mxu1 %vm72_vm1, %v26_v10  ;;  %v65_v30 = vld [vmem:[#allocation2 + $0x120] sm:$0xff]  ;;  %v64_v31 = vld [vmem:[#allocation2 + $0x118] sm:$0xff]  ;;  %v63_v32 = vld [vmem:[#allocation2 + $0x110] sm:$0xff] }
  0x19   :  { %462 = vmatprep.subr.mxu0 %v585_v0  ;;  %494 = vmatprep.mubr.msk.f32.mxu0 %vm586_vm0, %v585_v0  ;;  %v62_v33 = vld [vmem:[#allocation2 + $0x108] sm:$0xff]  ;;  %v61_v34 = vld [vmem:[#allocation2 + $0x100] sm:$0xff]  ;;  %v60_v35 = vld [vmem:[#allocation2 + $0xf8] sm:$0xff]  ;;  %p566_p9 = pnand %p565_p8, %p559_p5 }
  0x1a   :  { %463 = vmatpush3.msra.mxu0 %v52_v11  ;;  %497 = vmatprep.subr.mxu1 %v585_v0  ;;  %v59_v36 = vld [vmem:[#allocation2 + $0xf0] sm:$0xff]  ;;  %v58_v37 = vld [vmem:[#allocation2 + $0xe8] sm:$0xff]  ;;  %v57_v38 = vld [vmem:[#allocation2 + $0xe0] sm:$0xff] }
  0x1b   :  { %464 = vmatprep.subr.mxu0 %v585_v0  ;;  %529 = vmatprep.mubr.msk.f32.mxu1 %vm586_vm0, %v585_v0  ;;  %v56_v39 = vld [vmem:[#allocation2 + $0xd8] sm:$0xff]  ;;  %v393_v41 = vld [vmem:[#allocation2 + $0x140] ss:$0 sm:$0xff]  ;;  %v55_v48 = vld [vmem:[#allocation2 + $0xd0] sm:$0xff] }
  0x1c   :  { %465 = vmatpush3.msra.mxu0 %v51_v12  ;;  %498 = vmatpush3.msra.mxu1 %v68_v27  ;;  %v54_v49 = vld [vmem:[#allocation2 + $0xc8] sm:$0xff]  ;;  %v53_v50 = vld [vmem:[#allocation2 + $0xc0] sm:$0xff] }
  0x1d   :  { %466 = vmatprep.subr.mxu0 %v585_v0  ;;  %499 = vmatprep.subr.mxu1 %v585_v0  ;;  %v394_v51 = vld [vmem:[#allocation2 + $0x141] ss:$0 sm:$0xff]  ;;  %v395_v56 = vld [vmem:[#allocation2 + $0x142] ss:$0 sm:$0xff] }
  0x1e   :  { %467 = vmatpush3.msra.mxu0 %v50_v13  ;;  %500 = vmatpush3.msra.mxu1 %v67_v28 }
  0x1f   :  { %468 = vmatprep.subr.mxu0 %v585_v0  ;;  %501 = vmatprep.subr.mxu1 %v585_v0 }
  0x20   :  { %469 = vmatpush3.msra.mxu0 %v49_v14  ;;  %502 = vmatpush3.msra.mxu1 %v66_v29 }
  0x21   :  { %470 = vmatprep.subr.mxu0 %v585_v0  ;;  %503 = vmatprep.subr.mxu1 %v585_v0 }
  0x22   :  { %471 = vmatpush3.msra.mxu0 %v48_v15  ;;  %504 = vmatpush3.msra.mxu1 %v65_v30 }
  0x23   :  { %472 = vmatprep.subr.mxu0 %v585_v0  ;;  %505 = vmatprep.subr.mxu1 %v585_v0 }
  0x24   :  { %473 = vmatpush3.msra.mxu0 %v47_v16  ;;  %506 = vmatpush3.msra.mxu1 %v64_v31 }
  0x25   :  { %474 = vmatprep.subr.mxu0 %v585_v0  ;;  %507 = vmatprep.subr.mxu1 %v585_v0 }
  0x26   :  { %475 = vmatpush3.msra.mxu0 %v46_v17  ;;  %508 = vmatpush3.msra.mxu1 %v63_v32 }
  0x27   :  { %476 = vmatprep.subr.mxu0 %v585_v0  ;;  %509 = vmatprep.subr.mxu1 %v585_v0 }
  0x28   :  { %477 = vmatpush3.msra.mxu0 %v45_v18  ;;  %510 = vmatpush3.msra.mxu1 %v62_v33 }
  0x29   :  { %478 = vmatprep.subr.mxu0 %v585_v0  ;;  %511 = vmatprep.subr.mxu1 %v585_v0 }
  0x2a   :  { %479 = vmatpush3.msra.mxu0 %v44_v19  ;;  %512 = vmatpush3.msra.mxu1 %v61_v34 }
  0x2b   :  { %480 = vmatprep.subr.mxu0 %v585_v0  ;;  %513 = vmatprep.subr.mxu1 %v585_v0 }
  0x2c   :  { %481 = vmatpush3.msra.mxu0 %v43_v20  ;;  %514 = vmatpush3.msra.mxu1 %v60_v35 }
  0x2d   :  { %482 = vmatprep.subr.mxu0 %v585_v0  ;;  %515 = vmatprep.subr.mxu1 %v585_v0 }
  0x2e   :  { %483 = vmatpush3.msra.mxu0 %v42_v21  ;;  %516 = vmatpush3.msra.mxu1 %v59_v36 }
  0x2f   :  { %484 = vmatprep.subr.mxu0 %v585_v0  ;;  %517 = vmatprep.subr.mxu1 %v585_v0 }
  0x30   :  { %485 = vmatpush3.msra.mxu0 %v41_v22  ;;  %518 = vmatpush3.msra.mxu1 %v58_v37 }
  0x31   :  { %486 = vmatprep.subr.mxu0 %v585_v0  ;;  %519 = vmatprep.subr.mxu1 %v585_v0 }
  0x32   :  { %487 = vmatpush3.msra.mxu0 %v40_v23  ;;  %520 = vmatpush3.msra.mxu1 %v57_v38 }
  0x33   :  { %488 = vmatprep.subr.mxu0 %v585_v0  ;;  %521 = vmatprep.subr.mxu1 %v585_v0 }
  0x34   :  { %489 = vmatpush3.msra.mxu0 %v39_v24  ;;  %522 = vmatpush3.msra.mxu1 %v56_v39 }
  0x35   :  { %490 = vmatprep.subr.mxu0 %v585_v0  ;;  %523 = vmatprep.subr.mxu1 %v585_v0 }
  0x36   :  { %491 = vmatpush3.msra.mxu0 %v38_v25  ;;  %524 = vmatpush3.msra.mxu1 %v55_v48 }
  0x37   :  { %492 = vmatprep.subr.mxu0 %v585_v0  ;;  %525 = vmatprep.subr.mxu1 %v585_v0 }
  0x38   :  { %493 = vmatpush3.msra.mxu0 %v37_v26  ;;  %526 = vmatpush3.msra.mxu1 %v54_v49 }
  0x39   :  { %527 = vmatprep.subr.mxu1 %v585_v0 }
  0x3a   :  { %528 = vmatpush3.msra.mxu1 %v53_v50 }
  0xd8   :  { %v142_v40 = vpop.f32.mrf.mxu0  ;;  %v215_v42 = vpop.f32.mrf.mxu1 }
  0xd9   :  { %v216_v43 = vadd.f32 %v215_v42, %v142_v40 }
  0xda   :  { %v450_v44 = vpop.f32.mrf.mxu0  ;;  %v461_v45 = vpop.f32.mrf.mxu1 }
  0xdb   :  { %v223_v46 = vadd.f32 %v393_v41, %v216_v43 }
  0xdd   :  { %v224_v47 = vmax.f32 %v223_v46, 0.0 }
  0xdf   :  { %495 = vmatmul.mubr.f32.vlgmr.msra.gmra.mxu0 %v224_v47 }
 0x19f   :  { %v295_v52 = vpop.f32.mrf.mxu0 }
 0x1a0   :  { %v296_v53 = vadd.f32 %v394_v51, %v295_v52 }
 0x1a1   :  { %v496_v54 = vpop.f32.mrf.mxu0 }
 0x1a2   :  { %v299_v55 = vmax.f32 %v296_v53, 0.0 }
 0x1a4   :  { %530 = vmatmul.mubr.f32.vlgmr.msra.gmra.mxu1 %v299_v55 }
 0x264   :  { %v370_v57 = vpop.f32.mrf.mxu1 }
 0x265   :  { %v371_v58 = vadd.f32 %v395_v56, %v370_v57 }
 0x266   :  { %v531_v59 = vpop.f32.mrf.mxu1 }
 0x267   :  { %374 = vst [vmem:[#allocation5] sm:$0x3] %v371_v58 }
 0x268   :  { %569 = shalt.err (!%p566_p9)
}
 0x269   :  { %384 = dma.vmem_to_hbm [thread:$0]  %s382_s19, 32, %s665_s2, [#allocation4]  }
 0x26a   :  { %580 = dma.done.wait [#allocation4], 32  }
 0x26b   :  { %581 = vsyncadd [#allocation4], 4294967264 }
 0x26c   :  { %388 = vsyncpa [#allocation3], 1 }
 0x26d   :  { %389 = vsyncpa [#allocation4], 1 }

</bundles_post_ra>
